<compile_context>
chip_gen: v7x
topology: tpu7x:2x2x1
jax: 0.10.0
libtpu: 0.0.40
codegen_flags: <defaults>
</compile_context>

<pallas_src>
import functools

import jax
import jax.numpy as jnp
from jax.experimental import pallas as pl
from jax.experimental.pallas import tpu as pltpu


def _round_up(n, m):
    return ((n + m - 1) // m) * m


def _choose_tm(M, K, Dp, budget_bytes=24 * 1024 * 1024):
    """Pick the M-tile: largest tile whose double-buffered working set fits a
    conservative VMEM budget and whose M-padding waste stays small."""

    def fits(tm):
        need = (2 * tm * K * 2        # bf16 patches tile, double-buffered
                + 2 * tm * Dp * 4     # f32 output tile, double-buffered
                + 2 * K * Dp * 2      # bf16 weight (resident)
                + 2 * Dp * 4)         # f32 bias (resident)
        return need <= budget_bytes

    m_eff = max(M, 16)                      # bf16 sublane packing minimum
    cands = [c for c in (8192, 4096, 2048, 1024, 512, 256, 128, 64, 32, 16)
             if fits(c) and c <= _round_up(m_eff, 16)]
    if not cands:
        return 16
    # Prefer the largest tile whose padded M stays within ~6% of M (fewer grid
    # steps without inflating total work); otherwise minimize padded work.
    allowed = m_eff + max(m_eff // 16, 16)
    good = [c for c in cands if _round_up(m_eff, c) <= allowed]
    if good:
        return max(good)
    return min(cands, key=lambda c: (_round_up(m_eff, c), -c))


def _patch_embed_kernel(p_ref, w_ref, b_ref, o_ref):
    # p_ref: (TM, K) bf16   w_ref: (K, Dp) bf16   b_ref: (1, Dp) f32
    # o_ref: (TM, Dp).  MXU matmul with f32 accumulation, f32 bias add (VPU,
    # free filler in this memory-bound regime).
    acc = jnp.dot(p_ref[...], w_ref[...], preferred_element_type=jnp.float32)
    o_ref[...] = (acc + b_ref[...]).astype(o_ref.dtype)


def _single_scale_embed(x, weight, bias, p):
    """nn.Conv2d(C, D, kernel_size=p, stride=p)(x).flatten(2).transpose(1, 2)."""
    B, C, H, W = x.shape
    D = weight.shape[0]
    Hp, Wp = H // p, W // p
    assert Hp > 0 and Wp > 0, "patch size larger than image"

    M = B * Hp * Wp
    K = C * p * p
    Dp = _round_up(D, 128)          # lane-dense output (avoid masked vst.msk)

    # --- patch extraction (stride=p conv drops any spatial remainder) -------
    # TODO(synk): fold the im2col into the kernel (x BlockSpec over patch-row
    # strips + in-kernel relayout) to save the (M, K) HBM round trip; with
    # small C / p the in-kernel transpose is layout-hostile, so it stays as
    # XLA glue fused under the outer jit for now.
    xc = x[:, :, : Hp * p, : Wp * p]
    patches = (
        xc.reshape(B, C, Hp, p, Wp, p)
        .transpose(0, 2, 4, 1, 3, 5)              # (B, Hp, Wp, C, p, p)
        .reshape(M, K)
        .astype(jnp.bfloat16)                      # half the DMA bytes, bf16 MXU
    )

    TM = _choose_tm(M, K, Dp)
    Mp = _round_up(max(M, TM), TM)
    if Mp != M:
        patches = jnp.pad(patches, ((0, Mp - M), (0, 0)))

    wmat = weight.reshape(D, K).T.astype(jnp.bfloat16)      # (K, D)
    bvec = bias.astype(jnp.float32).reshape(1, D)           # (1, D)
    if Dp != D:
        wmat = jnp.pad(wmat, ((0, 0), (0, Dp - D)))         # zero cols -> exact 0
        bvec = jnp.pad(bvec, ((0, 0), (0, Dp - D)))

    grid = (Mp // TM,)
    cost = pl.CostEstimate(
        flops=2 * Mp * K * Dp,
        transcendentals=0,
        bytes_accessed=Mp * K * 2 + K * Dp * 2 + Dp * 4 + Mp * Dp * 4,
    )

    out = pl.pallas_call(
        _patch_embed_kernel,
        out_shape=jax.ShapeDtypeStruct((Mp, Dp), x.dtype),
        grid=grid,
        in_specs=[
            # M-tiled patches: double-buffered HBM->VMEM prefetch per tile.
            pl.BlockSpec((TM, K), lambda i: (i, 0)),
            # Weight / bias: constant index_map -> copied once, stay resident.
            pl.BlockSpec((K, Dp), lambda i: (0, 0)),
            pl.BlockSpec((1, Dp), lambda i: (0, 0)),
        ],
        out_specs=pl.BlockSpec((TM, Dp), lambda i: (i, 0)),
        compiler_params=pltpu.CompilerParams(
            # M tiles are independent -> shard across v7x's two TensorCores
            # (harmless no-op on single-TC v5e/v6e).
            dimension_semantics=("parallel",),
            vmem_limit_bytes=32 * 1024 * 1024,
        ),
        cost_estimate=cost,
    )(patches, wmat, bvec)

    if Mp != M or Dp != D:
        out = out[:M, :D]                 # drop M padding and lane padding
    return out.reshape(B, Hp * Wp, D)     # == conv(x).flatten(2).transpose(1, 2)


# TODO(synk): fuse the per-scale calls into a single pallas_call (stacked
# weights + PrefetchScalarGridSpec scale->tile map) to amortize launch /
# pipeline warm-up; scales have different K so they stay separate calls under
# one jit for now (launch cost is negligible at realistic sizes).
@functools.partial(jax.jit, static_argnames=("patch_sizes",))
def multi_scale_patch_embed(x, params, patch_sizes):
    """Forward pass of MultiScalePatchEmbed: returns a list of (B, N_i, D)."""
    return [_single_scale_embed(x, w, b, p)
            for p, (w, b) in zip(patch_sizes, params)]


def init_params(key, patch_sizes, in_chans, embed_dim, dtype=jnp.float32):
    """Deterministic synthetic Conv2d weights: (D, C, p, p) and bias (D,)."""
    params = []
    for idx, p in enumerate(patch_sizes):
        kw, kb = jax.random.split(jax.random.fold_in(key, idx))
        fan_in = in_chans * p * p
        w = jax.random.normal(kw, (embed_dim, in_chans, p, p), dtype) / jnp.sqrt(
            jnp.asarray(fan_in, dtype))
        b = 0.01 * jax.random.normal(kb, (embed_dim,), dtype)
        params.append((w, b))
    return params


def _reference(x, params, patch_sizes):
    """Pure-JAX f32 reference (same math, no Pallas) for a sanity check."""
    outs = []
    for p, (w, b) in zip(patch_sizes, params):
        B, C, H, W = x.shape
        D = w.shape[0]
        Hp, Wp = H // p, W // p
        xc = x[:, :, : Hp * p, : Wp * p]
        patches = (
            xc.reshape(B, C, Hp, p, Wp, p)
            .transpose(0, 2, 4, 1, 3, 5)
            .reshape(B * Hp * Wp, C * p * p)
        )
        ref = patches @ w.reshape(D, -1).T + b[None, :]
        outs.append(ref.reshape(B, Hp * Wp, D))
    return outs


if __name__ == "__main__":
    # Small shapes consistent with the module: batch=2, in_chans=4,
    # img_size=16, patch_sizes=(4, 8, 16), embed_dim=32.
    B, C, IMG, D = 2, 4, 16, 32
    patch_sizes = (4, 8, 16)

    key = jax.random.PRNGKey(0)
    kx, kp = jax.random.split(key)
    x = jax.random.normal(kx, (B, C, IMG, IMG), jnp.float32)
    params = init_params(kp, patch_sizes, C, D)

    outs = multi_scale_patch_embed(x, params, patch_sizes)
    outs = [jax.block_until_ready(o) for o in outs]

    refs = _reference(x, params, patch_sizes)
    for p, o, r in zip(patch_sizes, outs, refs):
        n = (IMG // p) ** 2
        assert o.shape == (B, n, D), (p, o.shape)
        # bf16 MXU inputs (f32 accumulate) -> bf16-level tolerance vs f32 ref.
        assert jnp.allclose(o, r, atol=5e-2, rtol=5e-2), f"mismatch at p={p}"

    print("KERNEL_OK")
</pallas_src>

<mosaic_0001>
module attributes {stable_mosaic.version = 11 : i64} {
  func.func @_patch_embed_kernel(%arg0: i32, %arg1: memref<32x64xbf16, #tpu.memory_space<vmem>>, %arg2: memref<64x128xbf16, #tpu.memory_space<vmem>>, %arg3: memref<1x128xf32, #tpu.memory_space<vmem>>, %arg4: memref<32x128xf32, #tpu.memory_space<vmem>>) attributes {dimension_semantics = [#tpu.dimension_semantics<parallel>], iteration_bounds = array<i64: 1>, scalar_prefetch = 0 : i64, scratch_operands = 0 : i64, tpu.core_type = #tpu.core_type<tc>, window_params = [{transform_indices = @transform_0, window_bounds = array<i64: 32, 64>}, {pipeline_mode = #tpu.pipeline_mode<synchronous>, transform_indices = @transform_1, window_bounds = array<i64: 64, 128>}, {pipeline_mode = #tpu.pipeline_mode<synchronous>, transform_indices = @transform_2, window_bounds = array<i64: 1, 128>}, {transform_indices = @transform_3, window_bounds = array<i64: 32, 128>}]} {
    %c0 = arith.constant 0 : index
    %c0_0 = arith.constant 0 : index
    %0 = vector.load %arg1[%c0, %c0_0] : memref<32x64xbf16, #tpu.memory_space<vmem>>, vector<32x64xbf16>
    %c0_1 = arith.constant 0 : index
    %c0_2 = arith.constant 0 : index
    %1 = vector.load %arg2[%c0_1, %c0_2] : memref<64x128xbf16, #tpu.memory_space<vmem>>, vector<64x128xbf16>
    %cst = arith.constant dense<0.000000e+00> : vector<32x128xf32>
    %2 = tpu.matmul %0, %1, %cst {dimension_numbers = #tpu.dot_dimension_numbers<[1], [0], [0], [1], [0, 0, 1, 1], [], []>} : vector<32x64xbf16>, vector<64x128xbf16>, vector<32x128xf32> -> vector<32x128xf32>
    %c0_3 = arith.constant 0 : index
    %c0_4 = arith.constant 0 : index
    %3 = vector.load %arg3[%c0_3, %c0_4] : memref<1x128xf32, #tpu.memory_space<vmem>>, vector<1x128xf32>
    %4 = vector.broadcast %3 : vector<1x128xf32> to vector<32x128xf32>
    %5 = arith.addf %2, %4 : vector<32x128xf32>
    %c0_5 = arith.constant 0 : index
    %c0_6 = arith.constant 0 : index
    %6 = vector.load %arg4[%c0_5, %c0_6] : memref<32x128xf32, #tpu.memory_space<vmem>>, vector<32x128xf32>
    tpu.vector_store %arg4[%c0_5, %c0_6], %5 {strides = array<i32>} : memref<32x128xf32, #tpu.memory_space<vmem>>, vector<32x128xf32>,
    return
  }
  func.func @transform_0(%arg0: i32) -> (i32, i32) {
    %c0_i32 = arith.constant 0 : i32
    %c0_i32_0 = arith.constant 0 : i32
    return %arg0, %c0_i32 : i32, i32
  }
  func.func @transform_1(%arg0: i32) -> (i32, i32) {
    %c0_i32 = arith.constant 0 : i32
    %c0_i32_0 = arith.constant 0 : i32
    %c0_i32_1 = arith.constant 0 : i32
    return %c0_i32, %c0_i32_0 : i32, i32
  }
  func.func @transform_2(%arg0: i32) -> (i32, i32) {
    %c0_i32 = arith.constant 0 : i32
    %c0_i32_0 = arith.constant 0 : i32
    %c0_i32_1 = arith.constant 0 : i32
    return %c0_i32, %c0_i32_0 : i32, i32
  }
  func.func @transform_3(%arg0: i32) -> (i32, i32) {
    %c0_i32 = arith.constant 0 : i32
    %c0_i32_0 = arith.constant 0 : i32
    return %arg0, %c0_i32 : i32, i32
  }
}

module attributes {stable_mosaic.version = 11 : i64} {
  func.func @_patch_embed_kernel(%arg0: i32, %arg1: memref<16x256xbf16, #tpu.memory_space<vmem>>, %arg2: memref<256x128xbf16, #tpu.memory_space<vmem>>, %arg3: memref<1x128xf32, #tpu.memory_space<vmem>>, %arg4: memref<16x128xf32, #tpu.memory_space<vmem>>) attributes {dimension_semantics = [#tpu.dimension_semantics<parallel>], iteration_bounds = array<i64: 1>, scalar_prefetch = 0 : i64, scratch_operands = 0 : i64, tpu.core_type = #tpu.core_type<tc>, window_params = [{transform_indices = @transform_0, window_bounds = array<i64: 16, 256>}, {pipeline_mode = #tpu.pipeline_mode<synchronous>, transform_indices = @transform_1, window_bounds = array<i64: 256, 128>}, {pipeline_mode = #tpu.pipeline_mode<synchronous>, transform_indices = @transform_2, window_bounds = array<i64: 1, 128>}, {transform_indices = @transform_3, window_bounds = array<i64: 16, 128>}]} {
    %c0 = arith.constant 0 : index
    %c0_0 = arith.constant 0 : index
    %0 = vector.load %arg1[%c0, %c0_0] : memref<16x256xbf16, #tpu.memory_space<vmem>>, vector<16x256xbf16>
    %c0_1 = arith.constant 0 : index
    %c0_2 = arith.constant 0 : index
    %1 = vector.load %arg2[%c0_1, %c0_2] : memref<256x128xbf16, #tpu.memory_space<vmem>>, vector<256x128xbf16>
    %cst = arith.constant dense<0.000000e+00> : vector<16x128xf32>
    %2 = tpu.matmul %0, %1, %cst {dimension_numbers = #tpu.dot_dimension_numbers<[1], [0], [0], [1], [0, 0, 1, 1], [], []>} : vector<16x256xbf16>, vector<256x128xbf16>, vector<16x128xf32> -> vector<16x128xf32>
    %c0_3 = arith.constant 0 : index
    %c0_4 = arith.constant 0 : index
    %3 = vector.load %arg3[%c0_3, %c0_4] : memref<1x128xf32, #tpu.memory_space<vmem>>, vector<1x128xf32>
    %4 = vector.broadcast %3 : vector<1x128xf32> to vector<16x128xf32>
    %5 = arith.addf %2, %4 : vector<16x128xf32>
    %c0_5 = arith.constant 0 : index
    %c0_6 = arith.constant 0 : index
    %6 = vector.load %arg4[%c0_5, %c0_6] : memref<16x128xf32, #tpu.memory_space<vmem>>, vector<16x128xf32>
    tpu.vector_store %arg4[%c0_5, %c0_6], %5 {strides = array<i32>} : memref<16x128xf32, #tpu.memory_space<vmem>>, vector<16x128xf32>,
    return
  }
  func.func @transform_0(%arg0: i32) -> (i32, i32) {
    %c0_i32 = arith.constant 0 : i32
    %c0_i32_0 = arith.constant 0 : i32
    return %arg0, %c0_i32 : i32, i32
  }
  func.func @transform_1(%arg0: i32) -> (i32, i32) {
    %c0_i32 = arith.constant 0 : i32
    %c0_i32_0 = arith.constant 0 : i32
    %c0_i32_1 = arith.constant 0 : i32
    return %c0_i32, %c0_i32_0 : i32, i32
  }
  func.func @transform_2(%arg0: i32) -> (i32, i32) {
    %c0_i32 = arith.constant 0 : i32
    %c0_i32_0 = arith.constant 0 : i32
    %c0_i32_1 = arith.constant 0 : i32
    return %c0_i32, %c0_i32_0 : i32, i32
  }
  func.func @transform_3(%arg0: i32) -> (i32, i32) {
    %c0_i32 = arith.constant 0 : i32
    %c0_i32_0 = arith.constant 0 : i32
    return %arg0, %c0_i32 : i32, i32
  }
}

module attributes {stable_mosaic.version = 11 : i64} {
  func.func @_patch_embed_kernel(%arg0: i32, %arg1: memref<16x1024xbf16, #tpu.memory_space<vmem>>, %arg2: memref<1024x128xbf16, #tpu.memory_space<vmem>>, %arg3: memref<1x128xf32, #tpu.memory_space<vmem>>, %arg4: memref<16x128xf32, #tpu.memory_space<vmem>>) attributes {dimension_semantics = [#tpu.dimension_semantics<parallel>], iteration_bounds = array<i64: 1>, scalar_prefetch = 0 : i64, scratch_operands = 0 : i64, tpu.core_type = #tpu.core_type<tc>, window_params = [{transform_indices = @transform_0, window_bounds = array<i64: 16, 1024>}, {pipeline_mode = #tpu.pipeline_mode<synchronous>, transform_indices = @transform_1, window_bounds = array<i64: 1024, 128>}, {pipeline_mode = #tpu.pipeline_mode<synchronous>, transform_indices = @transform_2, window_bounds = array<i64: 1, 128>}, {transform_indices = @transform_3, window_bounds = array<i64: 16, 128>}]} {
    %c0 = arith.constant 0 : index
    %c0_0 = arith.constant 0 : index
    %0 = vector.load %arg1[%c0, %c0_0] : memref<16x1024xbf16, #tpu.memory_space<vmem>>, vector<16x1024xbf16>
    %c0_1 = arith.constant 0 : index
    %c0_2 = arith.constant 0 : index
    %1 = vector.load %arg2[%c0_1, %c0_2] : memref<1024x128xbf16, #tpu.memory_space<vmem>>, vector<1024x128xbf16>
    %cst = arith.constant dense<0.000000e+00> : vector<16x128xf32>
    %2 = tpu.matmul %0, %1, %cst {dimension_numbers = #tpu.dot_dimension_numbers<[1], [0], [0], [1], [0, 0, 1, 1], [], []>} : vector<16x1024xbf16>, vector<1024x128xbf16>, vector<16x128xf32> -> vector<16x128xf32>
    %c0_3 = arith.constant 0 : index
    %c0_4 = arith.constant 0 : index
    %3 = vector.load %arg3[%c0_3, %c0_4] : memref<1x128xf32, #tpu.memory_space<vmem>>, vector<1x128xf32>
    %4 = vector.broadcast %3 : vector<1x128xf32> to vector<16x128xf32>
    %5 = arith.addf %2, %4 : vector<16x128xf32>
    %c0_5 = arith.constant 0 : index
    %c0_6 = arith.constant 0 : index
    %6 = vector.load %arg4[%c0_5, %c0_6] : memref<16x128xf32, #tpu.memory_space<vmem>>, vector<16x128xf32>
    tpu.vector_store %arg4[%c0_5, %c0_6], %5 {strides = array<i32>} : memref<16x128xf32, #tpu.memory_space<vmem>>, vector<16x128xf32>,
    return
  }
  func.func @transform_0(%arg0: i32) -> (i32, i32) {
    %c0_i32 = arith.constant 0 : i32
    %c0_i32_0 = arith.constant 0 : i32
    return %arg0, %c0_i32 : i32, i32
  }
  func.func @transform_1(%arg0: i32) -> (i32, i32) {
    %c0_i32 = arith.constant 0 : i32
    %c0_i32_0 = arith.constant 0 : i32
    %c0_i32_1 = arith.constant 0 : i32
    return %c0_i32, %c0_i32_0 : i32, i32
  }
  func.func @transform_2(%arg0: i32) -> (i32, i32) {
    %c0_i32 = arith.constant 0 : i32
    %c0_i32_0 = arith.constant 0 : i32
    %c0_i32_1 = arith.constant 0 : i32
    return %c0_i32, %c0_i32_0 : i32, i32
  }
  func.func @transform_3(%arg0: i32) -> (i32, i32) {
    %c0_i32 = arith.constant 0 : i32
    %c0_i32_0 = arith.constant 0 : i32
    return %arg0, %c0_i32 : i32, i32
  }
}

</mosaic_0001>

<bundles_post_ra>
// kernel: multi_scale_patch_embed.3
= control target key start
LH: loop header
LB: loop body
LE: loop exit
PB: predicated region body
PF: predicated region fallthrough
CT: control target
= control target key end

     0   :  { %vm69_vm0 = vcmask 523264   ;;  %s261_s0 = inlined_call_operand.vmem [shape: bf16[32,64], index: 0, kind: input, shape index: {}]   ;;  %s262_s1 = inlined_call_operand.vmem [shape: bf16[64,128], index: 1, kind: input, shape index: {}]   ;;  %s263_s2 = inlined_call_operand.vmem [shape: f32[1,128], index: 2, kind: input, shape index: {}]   ;;  %s264_s3 = inlined_call_operand.hbm [shape: f32[32,128], index: 3, kind: output, shape index: {}]  }
   0x1   :  { %v175_v0 = vld [vmem:[%s262_s1] sm:$0xff]   ;;  %v176_v1 = vld [vmem:[%s262_s1 + $0x8] sm:$0xff]   ;;  %v177_v2 = vld [vmem:[%s262_s1 + $0x10] sm:$0xff]  }
   0x2   :  { %160 = vmatprep.subr.bf16.mxu0 %v175_v0  ;;  %v179_v3 = vld [vmem:[%s261_s0] sm:$0xff]  }
   0x3   :  { %161 = vmatpush3.bf16.msra.mxu0 %v175_v0  ;;  %168 = vmatprep.mubr.msk.bf16.mxu0 %vm69_vm0, %v179_v3 }
   0x4   :  { %162 = vmatprep.subr.bf16.mxu0 %v176_v1 }
   0x5   :  { %8 = vsyncpa [#allocation3], 0  ;;  %v178_v4 = vld [vmem:[%s262_s1 + $0x18] sm:$0xff]   ;;  %v180_v5 = vld [vmem:[%s261_s0 + $0x8] sm:$0xff]   ;;  %s205_s26 = smov [#allocation2]  }
   0x6   :  { %v145_v6 = vld [vmem:[%s263_s2] ss:$0 sm:$0xff]  ;;  %s134_s27 = sshll.u32 %s205_s26, 4  ;;  %s135_s27 = int_to_ptr.vmem [resolvable:$true] %s134_s27 }
   0x7   :  { %163 = vmatpush3.bf16.msra.mxu0 %v176_v1  ;;  %s181_s0 = scalar_lea.vmem %s135_s27, 512  ;;  %p186_p1 = scmp.lt.s32.totalorder %s135_s27, %s135_s27 }
   0x8   :  { %164 = vmatprep.subr.bf16.mxu0 %v177_v2  ;;  %p182_p0 = scmp.ne.s32.totalorder %s135_s27, %s181_s0  ;;  %p187_p2 = scmp.lt.s32.totalorder %s181_s0, %s181_s0 }
   0xa   :  { %p188_p3 = por %p187_p2, %p186_p1 }
   0xb   :  { %165 = vmatpush3.bf16.msra.mxu0 %v177_v2 }
   0xc   :  { %166 = vmatprep.subr.bf16.mxu0 %v178_v4  ;;  %p189_p4 = pnand %p188_p3, %p182_p0 }
   0xf   :  { %167 = vmatpush3.bf16.msra.mxu0 %v178_v4 }
  0x12   :  { %169 = vmatmul.mubr.msk.bf16.vlgmr.msra.gmra.mrb[0].mxu0 %vm69_vm0, %v180_v5 }
  0xe5   :  { %v170_v7 = vpop.f32.mrb[0].mxu0 }
  0xe6   :  { %v119_v8 = vadd.f32 %v170_v7, %v145_v6  ;;  %v110_v9 = vpop.f32.mrb[1].mxu0 }
  0xe7   :  { %v111_v10 = vadd.f32 %v145_v6, %v110_v9  ;;  %v171_v11 = vpop.f32.mrb[2].mxu0 }
  0xe8   :  { %127 = vst [vmem:[#allocation2 + $0x10] sm:$0xff] %v119_v8  ;;  %v122_v12 = vadd.f32 %v171_v11, %v145_v6  ;;  %v113_v13 = vpop.f32.mrb[3].mxu0 }
  0xe9   :  { %125 = vst [vmem:[#allocation2] sm:$0xff] %v111_v10  ;;  %v114_v14 = vadd.f32 %v145_v6, %v113_v13 }
  0xea   :  { %128 = vst [vmem:[#allocation2 + $0x18] sm:$0xff] %v122_v12 }
  0xeb   :  { %126 = vst [vmem:[#allocation2 + $0x8] sm:$0xff] %v114_v14 }
  0xec   :  { %192 = shalt.err (!%p189_p4)
}
  0xed   :  { %s193_s28 = scalar_lea.hbm %s264_s3, 512 }
  0xee   :  { %p194_p5 = scmp.ne.s32.totalorder %s264_s3, %s193_s28  ;;  %p197_p6 = scmp.lt.u32.totalorder %s193_s28, %s264_s3 }
  0xf0   :  { %p199_p7 = pnand %p197_p6, %p194_p5 }
  0xf2   :  { %202 = shalt.err (!%p199_p7)
}
  0xf3   :  { %s206_s6 = smov 128   ;;  %s207_s7 = smov 8  }
  0xf4   :  { %140 = dma.vmem_to_hbm [thread:$0]  %s135_s27, 512, %s264_s3, [#allocation3], %s206_s6, %s206_s6, %s207_s7  }
  0xf5   :  { %203 = dma.done.wait [#allocation3], 512  }
  0xf6   :  { %204 = vsyncadd [#allocation3], 4294966784 }
  0xf7   :  { %144 = vsyncpa [#allocation3], 1 }

// kernel: multi_scale_patch_embed.4
= control target key start
LH: loop header
LB: loop body
LE: loop exit
PB: predicated region body
PF: predicated region fallthrough
CT: control target
= control target key end

     0   :  { %s352_s1 = inlined_call_operand.vmem [shape: bf16[256,128], index: 1, kind: input, shape index: {}]   ;;  %s353_s0 = inlined_call_operand.vmem [shape: bf16[16,256], index: 0, kind: input, shape index: {}]   ;;  %s354_s2 = inlined_call_operand.vmem [shape: f32[1,128], index: 2, kind: input, shape index: {}]   ;;  %s355_s3 = inlined_call_operand.vmem [shape: f32[16,128], index: 3, kind: output, shape index: {}]  }
   0x1   :  { %v250_v0 = vld [vmem:[%s352_s1 + $0x40] sm:$0xff]   ;;  %v252_v2 = vld [vmem:[%s352_s1 + $0x48] sm:$0xff]   ;;  %v254_v4 = vld [vmem:[%s352_s1 + $0x50] sm:$0xff]  }
   0x2   :  { %v251_v1 = vld [vmem:[%s352_s1] sm:$0xff]   ;;  %228 = vmatprep.subr.bf16.mxu0 %v250_v0  ;;  %v253_v3 = vld [vmem:[%s352_s1 + $0x8] sm:$0xff]   ;;  %v255_v5 = vld [vmem:[%s352_s1 + $0x10] sm:$0xff]  }
   0x3   :  { %229 = vmatpush3.bf16.msra.mxu0 %v251_v1  ;;  %v256_v6 = vld [vmem:[%s352_s1 + $0x58] sm:$0xff]   ;;  %v258_v8 = vld [vmem:[%s352_s1 + $0x60] sm:$0xff]   ;;  %v260_v10 = vld [vmem:[%s352_s1 + $0x68] sm:$0xff]  }
   0x4   :  { %230 = vmatprep.subr.bf16.mxu0 %v252_v2  ;;  %v257_v7 = vld [vmem:[%s352_s1 + $0x18] sm:$0xff]   ;;  %v259_v9 = vld [vmem:[%s352_s1 + $0x20] sm:$0xff]   ;;  %v261_v12 = vld [vmem:[%s352_s1 + $0x28] sm:$0xff]  }
   0x5   :  { %v268_v11 = vld [vmem:[%s353_s0 + $0x4] ss:$8 sps:$4 sm:$0xff]   ;;  %v262_v13 = vld [vmem:[%s352_s1 + $0x70] sm:$0xff]   ;;  %v264_v15 = vld [vmem:[%s352_s1 + $0x78] sm:$0xff]  }
   0x6   :  { %194 = vmatprep.mubr.bf16.mxu0 %v268_v11  ;;  %v263_v14 = vld [vmem:[%s352_s1 + $0x30] sm:$0xff]   ;;  %v265_v16 = vld [vmem:[%s352_s1 + $0x38] sm:$0xff]   ;;  %v266_v17 = vld [vmem:[%s353_s0] ss:$8 sps:$4 sm:$0xff]  }
   0x7   :  { %231 = vmatpush3.bf16.msra.mxu0 %v253_v3  ;;  %v209_v19 = vld [vmem:[%s354_s2] ss:$0 sm:$0xff] }
   0x8   :  { %232 = vmatprep.subr.bf16.mxu0 %v254_v4 }
   0xb   :  { %233 = vmatpush3.bf16.msra.mxu0 %v255_v5 }
   0xc   :  { %234 = vmatprep.subr.bf16.mxu0 %v256_v6 }
   0xf   :  { %235 = vmatpush3.bf16.msra.mxu0 %v257_v7 }
  0x10   :  { %236 = vmatprep.subr.bf16.mxu0 %v258_v8 }
  0x13   :  { %237 = vmatpush3.bf16.msra.mxu0 %v259_v9 }
  0x14   :  { %238 = vmatprep.subr.bf16.mxu0 %v260_v10 }
  0x17   :  { %239 = vmatpush3.bf16.msra.mxu0 %v261_v12 }
  0x18   :  { %240 = vmatprep.subr.bf16.mxu0 %v262_v13 }
  0x1b   :  { %241 = vmatpush3.bf16.msra.mxu0 %v263_v14 }
  0x1c   :  { %242 = vmatprep.subr.bf16.mxu0 %v264_v15 }
  0x1f   :  { %243 = vmatpush3.bf16.msra.mxu0 %v265_v16 }
  0x22   :  { %195 = vmatmul.mubr.bf16.vlgmr.msra.gmra.mrb[0].mxu0 %v266_v17 }
  0xf5   :  { %v244_v18 = vpop.f32.mrb[0].mxu0 }
  0xf6   :  { %v245_v20 = vpop.f32.mrb[1].mxu0 }
  0xf7   :  { %v246_v21 = vadd.f32 %v245_v20, %v244_v18  ;;  %v247_v22 = vpop.f32.mrb[2].mxu0 }
  0xf8   :  { %v248_v23 = vpop.f32.mrb[3].mxu0 }
  0xf9   :  { %v197_v24 = vadd.f32 %v246_v21, %v209_v19  ;;  %v249_v25 = vadd.f32 %v248_v23, %v247_v22 }
  0xfb   :  { %203 = vst [vmem:[%s355_s3] sm:$0xff] %v197_v24  ;;  %v200_v26 = vadd.f32 %v249_v25, %v209_v19 }
  0xfd   :  { %204 = vst [vmem:[%s355_s3 + $0x8] sm:$0xff] %v200_v26 }

// kernel: multi_scale_patch_embed.5
= control target key start
LH: loop header
LB: loop body
LE: loop exit
PB: predicated region body
PF: predicated region fallthrough
CT: control target
= control target key end

     0   :  { %s1222_s1 = inlined_call_operand.vmem [shape: bf16[1024,128], index: 1, kind: input, shape index: {}]   ;;  %s1223_s0 = inlined_call_operand.vmem [shape: bf16[16,1024], index: 0, kind: input, shape index: {}]   ;;  %s1224_s2 = inlined_call_operand.vmem [shape: f32[1,128], index: 2, kind: input, shape index: {}]   ;;  %s1225_s3 = inlined_call_operand.vmem [shape: f32[16,128], index: 3, kind: output, shape index: {}]  }
   0x1   :  { %v913_v0 = vld [vmem:[%s1222_s1 + $0x40] sm:$0xff]   ;;  %v917_v4 = vld [vmem:[%s1222_s1 + $0x48] sm:$0xff]   ;;  %v921_v8 = vld [vmem:[%s1222_s1 + $0x50] sm:$0xff]  }
   0x2   :  { %v914_v1 = vld [vmem:[%s1222_s1 + $0xc0] sm:$0xff]   ;;  %825 = vmatprep.subr.bf16.mxu0 %v913_v0  ;;  %v918_v5 = vld [vmem:[%s1222_s1 + $0xc8] sm:$0xff]   ;;  %v922_v9 = vld [vmem:[%s1222_s1 + $0xd0] sm:$0xff]  }
   0x3   :  { %v915_v2 = vld [vmem:[%s1222_s1] sm:$0xff]   ;;  %847 = vmatprep.subr.bf16.mxu1 %v914_v1  ;;  %v919_v6 = vld [vmem:[%s1222_s1 + $0x8] sm:$0xff]   ;;  %v923_v10 = vld [vmem:[%s1222_s1 + $0x10] sm:$0xff]  }
   0x4   :  { %v916_v3 = vld [vmem:[%s1222_s1 + $0x80] sm:$0xff]   ;;  %826 = vmatpush3.bf16.msra.mxu0 %v915_v2  ;;  %v920_v7 = vld [vmem:[%s1222_s1 + $0x88] sm:$0xff]   ;;  %v924_v11 = vld [vmem:[%s1222_s1 + $0x90] sm:$0xff]  }
   0x5   :  { %848 = vmatpush3.bf16.msra.mxu1 %v916_v3  ;;  %827 = vmatprep.subr.bf16.mxu0 %v917_v4  ;;  %v925_v12 = vld [vmem:[%s1222_s1 + $0x58] sm:$0xff]   ;;  %v929_v16 = vld [vmem:[%s1222_s1 + $0x60] sm:$0xff]   ;;  %v933_v20 = vld [vmem:[%s1222_s1 + $0x68] sm:$0xff]  }
   0x6   :  { %849 = vmatprep.subr.bf16.mxu1 %v918_v5  ;;  %v926_v13 = vld [vmem:[%s1222_s1 + $0xd8] sm:$0xff]   ;;  %v930_v17 = vld [vmem:[%s1222_s1 + $0xe0] sm:$0xff]   ;;  %v934_v21 = vld [vmem:[%s1222_s1 + $0xe8] sm:$0xff]  }
   0x7   :  { %v927_v14 = vld [vmem:[%s1222_s1 + $0x18] sm:$0xff]   ;;  %v931_v18 = vld [vmem:[%s1222_s1 + $0x20] sm:$0xff]   ;;  %v935_v22 = vld [vmem:[%s1222_s1 + $0x28] sm:$0xff]  }
   0x8   :  { %828 = vmatpush3.bf16.msra.mxu0 %v919_v6  ;;  %v928_v15 = vld [vmem:[%s1222_s1 + $0x98] sm:$0xff]   ;;  %v932_v19 = vld [vmem:[%s1222_s1 + $0xa0] sm:$0xff]   ;;  %v936_v23 = vld [vmem:[%s1222_s1 + $0xa8] sm:$0xff]  }
   0x9   :  { %850 = vmatpush3.bf16.msra.mxu1 %v920_v7  ;;  %829 = vmatprep.subr.bf16.mxu0 %v921_v8  ;;  %v937_v24 = vld [vmem:[%s1222_s1 + $0x70] sm:$0xff]   ;;  %v941_v28 = vld [vmem:[%s1222_s1 + $0x78] sm:$0xff]   ;;  %v15_v32 = vld [vmem:[%s1223_s0] sm:$0xff] }
   0xa   :  { %851 = vmatprep.subr.bf16.mxu1 %v922_v9  ;;  %v938_v25 = vld [vmem:[%s1222_s1 + $0xf0] sm:$0xff]   ;;  %v942_v29 = vld [vmem:[%s1222_s1 + $0xf8] sm:$0xff]   ;;  %v19_v33 = vld [vmem:[%s1223_s0 + $0x20] sm:$0xff] }
   0xb   :  { %v939_v26 = vld [vmem:[%s1222_s1 + $0x30] sm:$0xff]   ;;  %v943_v30 = vld [vmem:[%s1222_s1 + $0x38] sm:$0xff]   ;;  %v16_v34 = vld [vmem:[%s1223_s0 + $0x8] sm:$0xff]  ;;  %v753_v35 = vcombine.low %v15_v32, %v19_v33  ;;  %v754_v36 = vcombine.high %v15_v32, %v19_v33 }
   0xc   :  { %830 = vmatpush3.bf16.msra.mxu0 %v923_v10  ;;  %v940_v27 = vld [vmem:[%s1222_s1 + $0xb0] sm:$0xff]   ;;  %v944_v31 = vld [vmem:[%s1222_s1 + $0xb8] sm:$0xff]   ;;  %v20_v37 = vld [vmem:[%s1223_s0 + $0x28] sm:$0xff] }
   0xd   :  { %852 = vmatpush3.bf16.msra.mxu1 %v924_v11  ;;  %831 = vmatprep.subr.bf16.mxu0 %v925_v12  ;;  %v755_v38 = vcombine.low %v16_v34, %v20_v37  ;;  %v756_v39 = vcombine.high %v16_v34, %v20_v37  ;;  %v945_v40 = vld [vmem:[%s1222_s1 + $0x140] sm:$0xff]   ;;  %v949_v44 = vld [vmem:[%s1222_s1 + $0x148] sm:$0xff]   ;;  %v953_v48 = vld [vmem:[%s1222_s1 + $0x150] sm:$0xff]  }
   0xe   :  { %853 = vmatprep.subr.bf16.mxu1 %v926_v13  ;;  %614 = vmatprep.mubr.bf16.mxu0 %v754_v36  ;;  %v946_v41 = vld [vmem:[%s1222_s1 + $0x1c0] sm:$0xff]   ;;  %v950_v45 = vld [vmem:[%s1222_s1 + $0x1c8] sm:$0xff]   ;;  %v954_v49 = vld [vmem:[%s1222_s1 + $0x1d0] sm:$0xff]  }
   0xf   :  { %655 = vmatprep.mubr.bf16.mxu1 %v756_v39  ;;  %v947_v42 = vld [vmem:[%s1222_s1 + $0x100] sm:$0xff]   ;;  %v951_v46 = vld [vmem:[%s1222_s1 + $0x108] sm:$0xff]   ;;  %v955_v50 = vld [vmem:[%s1222_s1 + $0x110] sm:$0xff]  }
  0x10   :  { %832 = vmatpush3.bf16.msra.mxu0 %v927_v14  ;;  %v948_v43 = vld [vmem:[%s1222_s1 + $0x180] sm:$0xff]   ;;  %v952_v47 = vld [vmem:[%s1222_s1 + $0x188] sm:$0xff]   ;;  %v956_v51 = vld [vmem:[%s1222_s1 + $0x190] sm:$0xff]  }
  0x11   :  { %854 = vmatpush3.bf16.msra.mxu1 %v928_v15  ;;  %833 = vmatprep.subr.bf16.mxu0 %v929_v16  ;;  %v957_v52 = vld [vmem:[%s1222_s1 + $0x158] sm:$0xff]   ;;  %v961_v56 = vld [vmem:[%s1222_s1 + $0x160] sm:$0xff]   ;;  %v965_v60 = vld [vmem:[%s1222_s1 + $0x168] sm:$0xff]  }
  0x12   :  { %855 = vmatprep.subr.bf16.mxu1 %v930_v17  ;;  %v958_v53 = vld [vmem:[%s1222_s1 + $0x1d8] sm:$0xff]   ;;  %v962_v57 = vld [vmem:[%s1222_s1 + $0x1e0] sm:$0xff]   ;;  %v966_v61 = vld [vmem:[%s1222_s1 + $0x1e8] sm:$0xff]  }
  0x13   :  { %v959_v54 = vld [vmem:[%s1222_s1 + $0x118] sm:$0xff]   ;;  %v963_v58 = vld [vmem:[%s1222_s1 + $0x120] sm:$0xff]   ;;  %v967_v62 = vld [vmem:[%s1222_s1 + $0x128] sm:$0xff]  }
  0x14   :  { %834 = vmatpush3.bf16.msra.mxu0 %v931_v18  ;;  %v960_v55 = vld [vmem:[%s1222_s1 + $0x198] sm:$0xff]   ;;  %v964_v59 = vld [vmem:[%s1222_s1 + $0x1a0] sm:$0xff]   ;;  %v968_v63 = vld [vmem:[%s1222_s1 + $0x1a8] sm:$0xff]  }
  0x15   :  { %856 = vmatpush3.bf16.msra.mxu1 %v932_v19  ;;  %835 = vmatprep.subr.bf16.mxu0 %v933_v20  ;;  %v969_v0 = vld [vmem:[%s1222_s1 + $0x170] sm:$0xff]   ;;  %v973_v4 = vld [vmem:[%s1222_s1 + $0x178] sm:$0xff]   ;;  %v752_v18 = vld [vmem:[%s1224_s2] ss:$0 sm:$0xff] }
  0x16   :  { %857 = vmatprep.subr.bf16.mxu1 %v934_v21  ;;  %v970_v1 = vld [vmem:[%s1222_s1 + $0x1f0] sm:$0xff]   ;;  %v974_v5 = vld [vmem:[%s1222_s1 + $0x1f8] sm:$0xff]  }
  0x17   :  { %v971_v2 = vld [vmem:[%s1222_s1 + $0x130] sm:$0xff]   ;;  %v975_v6 = vld [vmem:[%s1222_s1 + $0x138] sm:$0xff]  }
  0x18   :  { %836 = vmatpush3.bf16.msra.mxu0 %v935_v22  ;;  %v972_v3 = vld [vmem:[%s1222_s1 + $0x1b0] sm:$0xff]   ;;  %v976_v7 = vld [vmem:[%s1222_s1 + $0x1b8] sm:$0xff]  }
  0x19   :  { %858 = vmatpush3.bf16.msra.mxu1 %v936_v23  ;;  %837 = vmatprep.subr.bf16.mxu0 %v937_v24  ;;  %v17_v8 = vld [vmem:[%s1223_s0 + $0x10] sm:$0xff]  ;;  %v18_v12 = vld [vmem:[%s1223_s0 + $0x18] sm:$0xff] }
  0x1a   :  { %859 = vmatprep.subr.bf16.mxu1 %v938_v25  ;;  %v21_v9 = vld [vmem:[%s1223_s0 + $0x30] sm:$0xff]  ;;  %v22_v13 = vld [vmem:[%s1223_s0 + $0x38] sm:$0xff] }
  0x1b   :  { %v757_v10 = vcombine.low %v17_v8, %v21_v9  ;;  %v758_v11 = vcombine.high %v17_v8, %v21_v9  ;;  %v759_v14 = vcombine.low %v18_v12, %v22_v13  ;;  %v760_v15 = vcombine.high %v18_v12, %v22_v13 }
  0x1c   :  { %838 = vmatpush3.bf16.msra.mxu0 %v939_v26 }
  0x1d   :  { %860 = vmatpush3.bf16.msra.mxu1 %v940_v27  ;;  %839 = vmatprep.subr.bf16.mxu0 %v941_v28 }
  0x1e   :  { %861 = vmatprep.subr.bf16.mxu1 %v942_v29 }
  0x20   :  { %840 = vmatpush3.bf16.msra.mxu0 %v943_v30 }
  0x21   :  { %862 = vmatpush3.bf16.msra.mxu1 %v944_v31  ;;  %869 = vmatprep.subr.bf16.mxu0 %v945_v40 }
  0x22   :  { %891 = vmatprep.subr.bf16.mxu1 %v946_v41 }
  0x23   :  { %615 = vmatmul.mubr.bf16.vlgmr.msra.gmra.mrb[0].mxu0 %v753_v35 }
  0x24   :  { %656 = vmatmul.mubr.bf16.vlgmr.msra.gmra.mrb[0].mxu1 %v755_v38  ;;  %870 = vmatpush3.bf16.msra.mxu0 %v947_v42 }
  0x25   :  { %892 = vmatpush3.bf16.msra.mxu1 %v948_v43  ;;  %871 = vmatprep.subr.bf16.mxu0 %v949_v44 }
  0x26   :  { %893 = vmatprep.subr.bf16.mxu1 %v950_v45  ;;  %696 = vmatprep.mubr.bf16.mxu0 %v758_v11 }
  0x27   :  { %737 = vmatprep.mubr.bf16.mxu1 %v760_v15 }
  0x28   :  { %872 = vmatpush3.bf16.msra.mxu0 %v951_v46 }
  0x29   :  { %894 = vmatpush3.bf16.msra.mxu1 %v952_v47  ;;  %873 = vmatprep.subr.bf16.mxu0 %v953_v48 }
  0x2a   :  { %895 = vmatprep.subr.bf16.mxu1 %v954_v49 }
  0x2c   :  { %874 = vmatpush3.bf16.msra.mxu0 %v955_v50 }
  0x2d   :  { %896 = vmatpush3.bf16.msra.mxu1 %v956_v51  ;;  %875 = vmatprep.subr.bf16.mxu0 %v957_v52 }
  0x2e   :  { %897 = vmatprep.subr.bf16.mxu1 %v958_v53 }
  0x30   :  { %876 = vmatpush3.bf16.msra.mxu0 %v959_v54 }
  0x31   :  { %898 = vmatpush3.bf16.msra.mxu1 %v960_v55  ;;  %877 = vmatprep.subr.bf16.mxu0 %v961_v56 }
  0x32   :  { %899 = vmatprep.subr.bf16.mxu1 %v962_v57 }
  0x34   :  { %878 = vmatpush3.bf16.msra.mxu0 %v963_v58 }
  0x35   :  { %900 = vmatpush3.bf16.msra.mxu1 %v964_v59  ;;  %879 = vmatprep.subr.bf16.mxu0 %v965_v60 }
  0x36   :  { %901 = vmatprep.subr.bf16.mxu1 %v966_v61 }
  0x38   :  { %880 = vmatpush3.bf16.msra.mxu0 %v967_v62 }
  0x39   :  { %902 = vmatpush3.bf16.msra.mxu1 %v968_v63  ;;  %881 = vmatprep.subr.bf16.mxu0 %v969_v0 }
  0x3a   :  { %903 = vmatprep.subr.bf16.mxu1 %v970_v1 }
  0x3c   :  { %882 = vmatpush3.bf16.msra.mxu0 %v971_v2 }
  0x3d   :  { %904 = vmatpush3.bf16.msra.mxu1 %v972_v3  ;;  %883 = vmatprep.subr.bf16.mxu0 %v973_v4 }
  0x3e   :  { %905 = vmatprep.subr.bf16.mxu1 %v974_v5 }
  0x40   :  { %884 = vmatpush3.bf16.msra.mxu0 %v975_v6 }
  0x41   :  { %906 = vmatpush3.bf16.msra.mxu1 %v976_v7 }
  0x43   :  { %697 = vmatmul.mubr.bf16.vlgmr.msra.gmra.mrb[4].mxu0 %v757_v10 }
  0x44   :  { %738 = vmatmul.mubr.bf16.vlgmr.msra.gmra.mrb[4].mxu1 %v759_v14 }
  0xf6   :  { %v841_v16 = vpop.f32.mrb[0].mxu0 }
  0xf7   :  { %v863_v17 = vpop.f32.mrb[0].mxu1  ;;  %v842_v19 = vpop.f32.mrb[1].mxu0 }
  0xf8   :  { %v843_v20 = vadd.f32 %v842_v19, %v841_v16  ;;  %v864_v21 = vpop.f32.mrb[1].mxu1  ;;  %v844_v22 = vpop.f32.mrb[2].mxu0 }
  0xf9   :  { %v865_v23 = vadd.f32 %v864_v21, %v863_v17  ;;  %v866_v24 = vpop.f32.mrb[2].mxu1  ;;  %v845_v25 = vpop.f32.mrb[3].mxu0 }
  0xfa   :  { %v617_v26 = vadd.f32 %v843_v20, %v752_v18  ;;  %v846_v27 = vadd.f32 %v845_v25, %v844_v22  ;;  %v867_v28 = vpop.f32.mrb[3].mxu1 }
  0xfb   :  { %v868_v29 = vadd.f32 %v867_v28, %v866_v24 }
  0xfc   :  { %v658_v30 = vadd.f32 %v865_v23, %v617_v26  ;;  %v620_v31 = vadd.f32 %v846_v27, %v752_v18 }
  0xfe   :  { %v661_v32 = vadd.f32 %v868_v29, %v620_v31 }
 0x116   :  { %v885_v33 = vpop.f32.mrb[4].mxu0 }
 0x117   :  { %v907_v34 = vpop.f32.mrb[4].mxu1  ;;  %v886_v35 = vpop.f32.mrb[5].mxu0 }
 0x118   :  { %v887_v36 = vadd.f32 %v886_v35, %v885_v33  ;;  %v908_v37 = vpop.f32.mrb[5].mxu1  ;;  %v888_v38 = vpop.f32.mrb[6].mxu0 }
 0x119   :  { %v909_v39 = vadd.f32 %v908_v37, %v907_v34  ;;  %v910_v40 = vpop.f32.mrb[6].mxu1  ;;  %v889_v41 = vpop.f32.mrb[7].mxu0 }
 0x11a   :  { %v699_v42 = vadd.f32 %v887_v36, %v658_v30  ;;  %v890_v43 = vadd.f32 %v889_v41, %v888_v38  ;;  %v911_v44 = vpop.f32.mrb[7].mxu1 }
 0x11b   :  { %v912_v45 = vadd.f32 %v911_v44, %v910_v40 }
 0x11c   :  { %v740_v46 = vadd.f32 %v909_v39, %v699_v42  ;;  %v702_v47 = vadd.f32 %v890_v43, %v661_v32 }
 0x11e   :  { %746 = vst [vmem:[%s1225_s3] sm:$0xff] %v740_v46  ;;  %v743_v48 = vadd.f32 %v912_v45, %v702_v47 }
 0x120   :  { %747 = vst [vmem:[%s1225_s3 + $0x8] sm:$0xff] %v743_v48 }

</bundles_post_ra>
